<compile_context>
chip_gen: v7x
topology: tpu7x:2x2x1
jax: 0.10.0
libtpu: 0.0.40
codegen_flags: <defaults>
</compile_context>

<pallas_src>
import jax
import jax.numpy as jnp
from jax import lax
from jax.experimental import pallas as pl
from jax.experimental.pallas import tpu as pltpu


# ----------------------------------------------------------------------------
# Kernel
# ----------------------------------------------------------------------------
def _conv_block_kernel(x_ref, w1_ref, b1_ref, w2_ref, b2_ref, o_ref):
    """Fused conv3x3+BN+ReLU -> conv3x3+BN+ReLU for one tile of batch images.

    x_ref : (Bt, H, W*Cin)       bf16  channel-minor input slab
    w1_ref: (3*W*Cin, W*Cmid)    bf16  dy-stacked banded conv1 weights (BN1 folded)
    b1_ref: (1, W*Cmid)          f32   BN1 bias, tiled per output column
    w2_ref: (3*W*Cmid, W*Cout)   bf16  dy-stacked banded conv2 weights (BN2 folded)
    b2_ref: (1, W*Cout)          f32
    o_ref : (Bt, H, W*Cout)      f32   lane-dense channel-minor output slab
    """
    bt, h, k1 = x_ref.shape
    m = bt * h                       # GEMM M dimension = all rows of the tile
    wcout = o_ref.shape[-1]

    # Row index of each stacked row within its own image -> 1-row halo masks.
    rows = lax.broadcasted_iota(jnp.int32, (m, 1), 0)
    rin = rows % h
    not_top = rin > 0                # has a valid row above (inside the image)
    not_bot = rin < (h - 1)          # has a valid row below

    def dy_stack(a):
        # a: (M, K) f32 activation rows (all images of the tile stacked).
        # Returns (M, 3K) bf16: [row-1 | row | row+1] per row, with the 1-row
        # halo zeroed at image boundaries.  pltpu.roll is an XLU sublane rotate
        # (off the VPU/MXU slots); no VMEM scratch round trip is needed.
        up = jnp.where(not_top, pltpu.roll(a, shift=1, axis=0), 0.0)
        dn = jnp.where(not_bot, pltpu.roll(a, shift=m - 1, axis=0), 0.0)
        return jnp.concatenate([up, a, dn], axis=-1).astype(jnp.bfloat16)

    x = x_ref[...].astype(jnp.float32).reshape(m, k1)

    # --- stage 1: one GEMM (M=Bt*H, K=3*W*Cin, N=W*Cmid), f32 accumulation ---
    mid = jnp.dot(dy_stack(x), w1_ref[...], preferred_element_type=jnp.float32)
    mid = jnp.maximum(mid + b1_ref[...], 0.0)            # folded BN1 + ReLU

    # --- stage 2: one GEMM (K=3*W*Cmid, N=W*Cout); `mid` never leaves VMEM ---
    out = jnp.dot(dy_stack(mid), w2_ref[...], preferred_element_type=jnp.float32)
    out = jnp.maximum(out + b2_ref[...], 0.0)            # folded BN2 + ReLU

    o_ref[...] = out.reshape(bt, h, wcout).astype(o_ref.dtype)


# ----------------------------------------------------------------------------
# Host-side weight preparation
# ----------------------------------------------------------------------------
def _fold_bn(gamma, beta, mean, var, eps=1e-5):
    scale = gamma / jnp.sqrt(var + eps)
    bias = beta - mean * scale
    return scale.astype(jnp.float32), bias.astype(jnp.float32)


def _stacked_banded_weights(w_oihw, bn_scale, width):
    """dy-stacked banded matrix Wb of shape (3*W*Cin, W*Cout) such that, for a
    stride-1 / pad-1 3x3 conv on channel-minor rows,

        conv(x)[i, j*Cout + o] = ([row(i-1) | row(i) | row(i+1)] @ Wb)[j*Cout + o]

    where row(r) is activation row r flattened to W*Cin lanes (zeros when r is
    outside the image).  The dx (column) zero-padding is absorbed into the bands
    (out-of-range taps are dropped), so no column halo is ever materialised.
    Eval-mode BN scale is folded into the output channel in f32 (exact), then the
    whole matrix is cast to bf16 for the MXU."""
    cout, cin, _, _ = w_oihw.shape
    w = jnp.transpose(w_oihw, (2, 3, 1, 0)).astype(jnp.float32)    # OIHW -> HWIO
    w = w * bn_scale[None, None, None, :]
    bands = []
    for dy in range(3):
        band = jnp.zeros((width * cin, width * cout), jnp.float32)
        for dx in range(3):
            # shift[p, j] = 1 iff p == j + dx - 1 (input col p feeds output col j);
            # taps falling outside [0, W) are simply absent -> implicit zero pad.
            shift = jnp.eye(width, width, k=1 - dx, dtype=jnp.float32)
            blk = jnp.einsum("pj,co->pcjo", shift, w[dy, dx])
            band = band + blk.reshape(width * cin, width * cout)
        bands.append(band)
    return jnp.concatenate(bands, axis=0).astype(jnp.bfloat16)     # (3*W*Cin, W*Cout)


def _pick_batch_tile(n, h, max_rows=512):
    """Largest divisor of n whose stacked row count Bt*H keeps the GEMM M
    dimension big (feeds the 128/256-row MXU) without blowing up VMEM."""
    best = 1
    for d in range(1, n + 1):
        if n % d == 0 and d * h <= max_rows:
            best = d
    return best


# ----------------------------------------------------------------------------
# Forward passes
# ----------------------------------------------------------------------------
def conv_block_forward_channels_last(x_cl, params, *, width):
    """Chainable entry point: x_cl is (N, H, W*Cin) channel-minor, returns
    (N, H, W*Cout) channel-minor.  Chain ConvBlocks / pooling in this layout and
    transpose to NCHW only at the network boundary (saves one HBM-round-trip
    relayout per block)."""
    n, h, wcin = x_cl.shape
    cin = wcin // width
    cmid = params["conv1_w"].shape[0]
    cout = params["conv2_w"].shape[0]

    s1, b1 = _fold_bn(params["bn1_gamma"], params["bn1_beta"],
                      params["bn1_mean"], params["bn1_var"])
    s2, b2 = _fold_bn(params["bn2_gamma"], params["bn2_beta"],
                      params["bn2_mean"], params["bn2_var"])
    w1 = _stacked_banded_weights(params["conv1_w"], s1, width)     # (3*W*Cin,  W*Cmid)
    w2 = _stacked_banded_weights(params["conv2_w"], s2, width)     # (3*W*Cmid, W*Cout)
    b1t = jnp.tile(b1, width).reshape(1, width * cmid)             # bias per out column
    b2t = jnp.tile(b2, width).reshape(1, width * cout)

    bt = _pick_batch_tile(n, h)
    grid = (n // bt,)

    out = pl.pallas_call(
        _conv_block_kernel,
        out_shape=jax.ShapeDtypeStruct((n, h, width * cout), jnp.float32),
        grid=grid,
        in_specs=[
            pl.BlockSpec((bt, h, wcin), lambda i: (i, 0, 0)),
            pl.BlockSpec((3 * width * cin, width * cmid), lambda i: (0, 0)),
            pl.BlockSpec((1, width * cmid), lambda i: (0, 0)),
            pl.BlockSpec((3 * width * cmid, width * cout), lambda i: (0, 0)),
            pl.BlockSpec((1, width * cout), lambda i: (0, 0)),
        ],
        out_specs=pl.BlockSpec((bt, h, width * cout), lambda i: (i, 0, 0)),
        compiler_params=pltpu.CompilerParams(
            # Batch-tile axis is embarrassingly parallel (v7x megacore sharding).
            dimension_semantics=("parallel",),
        ),
    )(x_cl.astype(jnp.bfloat16), w1, b1t, w2, b2t)
    return out


def conv_block_forward(x_nchw, params):
    """PyTorch-interface entry point: NCHW in, NCHW out (eval-mode BatchNorm).
    The NCHW<->channel-minor relayouts happen only at this boundary."""
    n, cin, h, w = x_nchw.shape
    cout = params["conv2_w"].shape[0]
    x_cl = jnp.transpose(x_nchw, (0, 2, 3, 1)).reshape(n, h, w * cin)
    out_cl = conv_block_forward_channels_last(x_cl, params, width=w)
    return jnp.transpose(out_cl.reshape(n, h, w, cout), (0, 3, 1, 2))


# ----------------------------------------------------------------------------
# Parameters & references
# ----------------------------------------------------------------------------
def make_params(key, in_channels, out_channels):
    ks = jax.random.split(key, 10)
    return {
        # PyTorch conv weight layout: (Cout, Cin, 3, 3)
        "conv1_w": jax.random.normal(ks[0], (out_channels, in_channels, 3, 3),
                                     jnp.float32) * 0.1,
        "conv2_w": jax.random.normal(ks[1], (out_channels, out_channels, 3, 3),
                                     jnp.float32) * 0.1,
        "bn1_gamma": 1.0 + 0.1 * jax.random.normal(ks[2], (out_channels,), jnp.float32),
        "bn1_beta": 0.1 * jax.random.normal(ks[3], (out_channels,), jnp.float32),
        "bn1_mean": 0.1 * jax.random.normal(ks[4], (out_channels,), jnp.float32),
        "bn1_var": 0.5 + jax.random.uniform(ks[5], (out_channels,), jnp.float32),
        "bn2_gamma": 1.0 + 0.1 * jax.random.normal(ks[6], (out_channels,), jnp.float32),
        "bn2_beta": 0.1 * jax.random.normal(ks[7], (out_channels,), jnp.float32),
        "bn2_mean": 0.1 * jax.random.normal(ks[8], (out_channels,), jnp.float32),
        "bn2_var": 0.5 + jax.random.uniform(ks[9], (out_channels,), jnp.float32),
    }


def _reference_forward_f32(x_nchw, params):
    """Pure-JAX f32 reference with the exact module semantics (conv->BN->ReLU)."""
    def conv(x, w):
        return jax.lax.conv_general_dilated(
            x, w, window_strides=(1, 1), padding=((1, 1), (1, 1)),
            dimension_numbers=("NCHW", "OIHW", "NCHW"),
            precision=jax.lax.Precision.HIGHEST)

    def bn(x, g, b, m, v, eps=1e-5):
        g, b, m, v = (a.reshape(1, -1, 1, 1) for a in (g, b, m, v))
        return (x - m) / jnp.sqrt(v + eps) * g + b

    x = jax.nn.relu(bn(conv(x_nchw, params["conv1_w"]),
                       params["bn1_gamma"], params["bn1_beta"],
                       params["bn1_mean"], params["bn1_var"]))
    x = jax.nn.relu(bn(conv(x, params["conv2_w"]),
                       params["bn2_gamma"], params["bn2_beta"],
                       params["bn2_mean"], params["bn2_var"]))
    return x


def _reference_forward_bf16(x_nchw, params):
    """Reference mimicking the kernel numerics: BN folded into weights,
    bf16 MXU operands, f32 accumulation, f32 epilogue."""
    def stage(x, w_oihw, gamma, beta, mean, var):
        scale, bias = _fold_bn(gamma, beta, mean, var)
        wf = (w_oihw * scale[:, None, None, None]).astype(jnp.bfloat16)
        y = jax.lax.conv_general_dilated(
            x.astype(jnp.bfloat16), wf, window_strides=(1, 1),
            padding=((1, 1), (1, 1)),
            dimension_numbers=("NCHW", "OIHW", "NCHW"),
            preferred_element_type=jnp.float32,
            precision=jax.lax.Precision.HIGHEST)
        return jax.nn.relu(y + bias.reshape(1, -1, 1, 1))

    x = stage(x_nchw, params["conv1_w"], params["bn1_gamma"], params["bn1_beta"],
              params["bn1_mean"], params["bn1_var"])
    x = stage(x, params["conv2_w"], params["bn2_gamma"], params["bn2_beta"],
              params["bn2_mean"], params["bn2_var"])
    return x


# ----------------------------------------------------------------------------
if __name__ == "__main__":
    key = jax.random.PRNGKey(0)
    k_x, k_p = jax.random.split(key)

    N, C_in, C_out, H, W = 2, 4, 8, 16, 16
    x = jax.random.normal(k_x, (N, C_in, H, W), jnp.float32)
    params = make_params(k_p, C_in, C_out)

    fwd = jax.jit(conv_block_forward)
    out = jax.block_until_ready(fwd(x, params))
    assert out.shape == (N, C_out, H, W)

    # Tight check vs a reference with the same bf16-MXU numerics.
    ref_bf16 = _reference_forward_bf16(x, params)
    assert jnp.allclose(out, ref_bf16, rtol=1e-2, atol=2e-3), (
        float(jnp.max(jnp.abs(out - ref_bf16))))

    # Looser check vs the exact f32 module semantics (difference is purely the
    # deliberate bf16 MXU-operand quantization).
    ref_f32 = _reference_forward_f32(x, params)
    assert jnp.allclose(out, ref_f32, rtol=5e-2, atol=5e-2), (
        float(jnp.max(jnp.abs(out - ref_f32))))

    print("KERNEL_OK")
</pallas_src>

<mosaic_0001>
module attributes {stable_mosaic.version = 11 : i64} {
  func.func @_conv_block_kernel(%arg0: i32, %arg1: memref<2x16x64xbf16, #tpu.memory_space<vmem>>, %arg2: memref<192x128xbf16, #tpu.memory_space<vmem>>, %arg3: memref<1x128xf32, #tpu.memory_space<vmem>>, %arg4: memref<384x128xbf16, #tpu.memory_space<vmem>>, %arg5: memref<1x128xf32, #tpu.memory_space<vmem>>, %arg6: memref<2x16x128xf32, #tpu.memory_space<vmem>>) attributes {dimension_semantics = [#tpu.dimension_semantics<parallel>], iteration_bounds = array<i64: 1>, scalar_prefetch = 0 : i64, scratch_operands = 0 : i64, tpu.core_type = #tpu.core_type<tc>, window_params = [{transform_indices = @transform_0, window_bounds = array<i64: 2, 16, 64>}, {pipeline_mode = #tpu.pipeline_mode<synchronous>, transform_indices = @transform_1, window_bounds = array<i64: 192, 128>}, {pipeline_mode = #tpu.pipeline_mode<synchronous>, transform_indices = @transform_2, window_bounds = array<i64: 1, 128>}, {pipeline_mode = #tpu.pipeline_mode<synchronous>, transform_indices = @transform_3, window_bounds = array<i64: 384, 128>}, {pipeline_mode = #tpu.pipeline_mode<synchronous>, transform_indices = @transform_4, window_bounds = array<i64: 1, 128>}, {transform_indices = @transform_5, window_bounds = array<i64: 2, 16, 128>}]} {
    %0 = tpu.iota {dimensions = array<i32: 0>} : vector<32x1xi32>
    %c16_i32 = arith.constant 16 : i32
    %c0_i32 = arith.constant 0 : i32
    %1 = arith.cmpi eq, %c16_i32, %c0_i32 : i32
    %c1_i32 = arith.constant 1 : i32
    %2 = arith.select %1, %c1_i32, %c16_i32 : i32
    %3 = vector.broadcast %2 : i32 to vector<32x1xi32>
    %4 = arith.remsi %0, %3 : vector<32x1xi32>
    %c0_i32_0 = arith.constant 0 : i32
    %5 = vector.broadcast %c0_i32_0 : i32 to vector<32x1xi32>
    %6 = arith.cmpi ne, %4, %5 : vector<32x1xi32>
    %c0_i32_1 = arith.constant 0 : i32
    %7 = vector.broadcast %c0_i32_1 : i32 to vector<32x1xi32>
    %8 = arith.cmpi slt, %4, %7 : vector<32x1xi32>
    %c0_i32_2 = arith.constant 0 : i32
    %9 = arith.cmpi slt, %2, %c0_i32_2 : i32
    %10 = vector.broadcast %9 : i1 to vector<32x1xi1>
    %11 = vector.broadcast %10 : vector<32x1xi1> to vector<32x1xi1>
    %12 = arith.xori %8, %11 : vector<32x1xi1>
    %13 = arith.andi %12, %6 : vector<32x1xi1>
    %14 = vector.broadcast %2 : i32 to vector<32x1xi32>
    %15 = arith.addi %4, %14 : vector<32x1xi32>
    %16 = arith.select %13, %15, %4 : vector<32x1xi1>, vector<32x1xi32>
    %c0_i32_3 = arith.constant 0 : i32
    %17 = vector.broadcast %c0_i32_3 : i32 to vector<32x1xi32>
    %18 = arith.cmpi sgt, %16, %17 : vector<32x1xi32>
    %c15_i32 = arith.constant 15 : i32
    %19 = vector.broadcast %c15_i32 : i32 to vector<32x1xi32>
    %20 = arith.cmpi slt, %16, %19 : vector<32x1xi32>
    %c0 = arith.constant 0 : index
    %c0_4 = arith.constant 0 : index
    %c0_5 = arith.constant 0 : index
    %21 = vector.load %arg1[%c0, %c0_4, %c0_5] : memref<2x16x64xbf16, #tpu.memory_space<vmem>>, vector<2x16x64xbf16>
    %22 = arith.extf %21 : vector<2x16x64xbf16> to vector<2x16x64xf32>
    %23 = vector.shape_cast %22 : vector<2x16x64xf32> to vector<32x64xf32>
    %c1_i32_6 = arith.constant 1 : i32
    %24 = tpu.dynamic_rotate %23 by %c1_i32_6 dim 0 : vector<32x64xf32>, i32 -> vector<32x64xf32>
    %cst = arith.constant 0.000000e+00 : f32
    %25 = vector.shape_cast %18 : vector<32x1xi1> to vector<32x1xi1>
    %26 = vector.broadcast %25 : vector<32x1xi1> to vector<32x64xi1>
    %27 = vector.broadcast %cst : f32 to vector<32x64xf32>
    %28 = arith.select %26, %24, %27 : vector<32x64xi1>, vector<32x64xf32>
    %c31_i32 = arith.constant 31 : i32
    %29 = tpu.dynamic_rotate %23 by %c31_i32 dim 0 : vector<32x64xf32>, i32 -> vector<32x64xf32>
    %cst_7 = arith.constant 0.000000e+00 : f32
    %30 = vector.shape_cast %20 : vector<32x1xi1> to vector<32x1xi1>
    %31 = vector.broadcast %30 : vector<32x1xi1> to vector<32x64xi1>
    %32 = vector.broadcast %cst_7 : f32 to vector<32x64xf32>
    %33 = arith.select %31, %29, %32 : vector<32x64xi1>, vector<32x64xf32>
    %34 = tpu.concatenate %28, %23, %33 in 1 : vector<32x64xf32>, vector<32x64xf32>, vector<32x64xf32> -> vector<32x192xf32>
    %35 = arith.truncf %34 : vector<32x192xf32> to vector<32x192xbf16>
    %c0_8 = arith.constant 0 : index
    %c0_9 = arith.constant 0 : index
    %36 = vector.load %arg2[%c0_8, %c0_9] : memref<192x128xbf16, #tpu.memory_space<vmem>>, vector<192x128xbf16>
    %cst_10 = arith.constant dense<0.000000e+00> : vector<32x128xf32>
    %37 = tpu.matmul %35, %36, %cst_10 {dimension_numbers = #tpu.dot_dimension_numbers<[1], [0], [0], [1], [0, 0, 1, 1], [], []>} : vector<32x192xbf16>, vector<192x128xbf16>, vector<32x128xf32> -> vector<32x128xf32>
    %c0_11 = arith.constant 0 : index
    %c0_12 = arith.constant 0 : index
    %38 = vector.load %arg3[%c0_11, %c0_12] : memref<1x128xf32, #tpu.memory_space<vmem>>, vector<1x128xf32>
    %39 = vector.broadcast %38 : vector<1x128xf32> to vector<32x128xf32>
    %40 = arith.addf %37, %39 : vector<32x128xf32>
    %cst_13 = arith.constant 0.000000e+00 : f32
    %41 = vector.broadcast %cst_13 : f32 to vector<32x128xf32>
    %42 = arith.maximumf %40, %41 : vector<32x128xf32>
    %c1_i32_14 = arith.constant 1 : i32
    %43 = tpu.dynamic_rotate %42 by %c1_i32_14 dim 0 : vector<32x128xf32>, i32 -> vector<32x128xf32>
    %cst_15 = arith.constant 0.000000e+00 : f32
    %44 = vector.shape_cast %18 : vector<32x1xi1> to vector<32x1xi1>
    %45 = vector.broadcast %44 : vector<32x1xi1> to vector<32x128xi1>
    %46 = vector.broadcast %cst_15 : f32 to vector<32x128xf32>
    %47 = arith.select %45, %43, %46 : vector<32x128xi1>, vector<32x128xf32>
    %c31_i32_16 = arith.constant 31 : i32
    %48 = tpu.dynamic_rotate %42 by %c31_i32_16 dim 0 : vector<32x128xf32>, i32 -> vector<32x128xf32>
    %cst_17 = arith.constant 0.000000e+00 : f32
    %49 = vector.shape_cast %20 : vector<32x1xi1> to vector<32x1xi1>
    %50 = vector.broadcast %49 : vector<32x1xi1> to vector<32x128xi1>
    %51 = vector.broadcast %cst_17 : f32 to vector<32x128xf32>
    %52 = arith.select %50, %48, %51 : vector<32x128xi1>, vector<32x128xf32>
    %53 = tpu.concatenate %47, %42, %52 in 1 : vector<32x128xf32>, vector<32x128xf32>, vector<32x128xf32> -> vector<32x384xf32>
    %54 = arith.truncf %53 : vector<32x384xf32> to vector<32x384xbf16>
    %c0_18 = arith.constant 0 : index
    %c0_19 = arith.constant 0 : index
    %55 = vector.load %arg4[%c0_18, %c0_19] : memref<384x128xbf16, #tpu.memory_space<vmem>>, vector<384x128xbf16>
    %cst_20 = arith.constant dense<0.000000e+00> : vector<32x128xf32>
    %56 = tpu.matmul %54, %55, %cst_20 {dimension_numbers = #tpu.dot_dimension_numbers<[1], [0], [0], [1], [0, 0, 1, 1], [], []>} : vector<32x384xbf16>, vector<384x128xbf16>, vector<32x128xf32> -> vector<32x128xf32>
    %c0_21 = arith.constant 0 : index
    %c0_22 = arith.constant 0 : index
    %57 = vector.load %arg5[%c0_21, %c0_22] : memref<1x128xf32, #tpu.memory_space<vmem>>, vector<1x128xf32>
    %58 = vector.broadcast %57 : vector<1x128xf32> to vector<32x128xf32>
    %59 = arith.addf %56, %58 : vector<32x128xf32>
    %cst_23 = arith.constant 0.000000e+00 : f32
    %60 = vector.broadcast %cst_23 : f32 to vector<32x128xf32>
    %61 = arith.maximumf %59, %60 : vector<32x128xf32>
    %62 = vector.shape_cast %61 : vector<32x128xf32> to vector<2x16x128xf32>
    %c0_24 = arith.constant 0 : index
    %c0_25 = arith.constant 0 : index
    %c0_26 = arith.constant 0 : index
    %63 = vector.load %arg6[%c0_24, %c0_25, %c0_26] : memref<2x16x128xf32, #tpu.memory_space<vmem>>, vector<2x16x128xf32>
    tpu.vector_store %arg6[%c0_24, %c0_25, %c0_26], %62 {strides = array<i32>} : memref<2x16x128xf32, #tpu.memory_space<vmem>>, vector<2x16x128xf32>,
    return
  }
  func.func @transform_0(%arg0: i32) -> (i32, i32, i32) {
    %c0_i32 = arith.constant 0 : i32
    %c0_i32_0 = arith.constant 0 : i32
    %c0_i32_1 = arith.constant 0 : i32
    return %arg0, %c0_i32, %c0_i32_0 : i32, i32, i32
  }
  func.func @transform_1(%arg0: i32) -> (i32, i32) {
    %c0_i32 = arith.constant 0 : i32
    %c0_i32_0 = arith.constant 0 : i32
    %c0_i32_1 = arith.constant 0 : i32
    return %c0_i32, %c0_i32_0 : i32, i32
  }
  func.func @transform_2(%arg0: i32) -> (i32, i32) {
    %c0_i32 = arith.constant 0 : i32
    %c0_i32_0 = arith.constant 0 : i32
    %c0_i32_1 = arith.constant 0 : i32
    return %c0_i32, %c0_i32_0 : i32, i32
  }
  func.func @transform_3(%arg0: i32) -> (i32, i32) {
    %c0_i32 = arith.constant 0 : i32
    %c0_i32_0 = arith.constant 0 : i32
    %c0_i32_1 = arith.constant 0 : i32
    return %c0_i32, %c0_i32_0 : i32, i32
  }
  func.func @transform_4(%arg0: i32) -> (i32, i32) {
    %c0_i32 = arith.constant 0 : i32
    %c0_i32_0 = arith.constant 0 : i32
    %c0_i32_1 = arith.constant 0 : i32
    return %c0_i32, %c0_i32_0 : i32, i32
  }
  func.func @transform_5(%arg0: i32) -> (i32, i32, i32) {
    %c0_i32 = arith.constant 0 : i32
    %c0_i32_0 = arith.constant 0 : i32
    %c0_i32_1 = arith.constant 0 : i32
    return %arg0, %c0_i32, %c0_i32_0 : i32, i32, i32
  }
}

</mosaic_0001>

<bundles_post_ra>
// kernel: tile.13
= control target key start
LH: loop header
LB: loop body
LE: loop exit
PB: predicated region body
PF: predicated region fallthrough
CT: control target
= control target key end

     0   :  { %s28_s0 = inlined_call_operand.vmem [shape: f32[8], index: 0, kind: input, shape index: {}]   ;;  %s29_s1 = inlined_call_operand.vmem [shape: f32[16,8], index: 1, kind: output, shape index: {}]  }
   0x1   :  { %v4_v0 = vld [vmem:[%s28_s0] ss:$0 sm:$0xff] }
   0x2   :  { %5 = vst [vmem:[%s29_s1] sm:$0xff] %v4_v0  ;;  %8 = vst [vmem:[%s29_s1 + $0x8] sm:$0xff] %v4_v0 }

// kernel: tile.14
= control target key start
LH: loop header
LB: loop body
LE: loop exit
PB: predicated region body
PF: predicated region fallthrough
CT: control target
= control target key end

     0   :  { %s131_s10 = smov 120   ;;  %s132_s11 = smov 104   ;;  %vm3_vm0 = vcmask 64512   ;;  %vm9_vm1 = vcmask 1048512   ;;  %vm15_vm2 = vcmask 982912   ;;  %vm21_vm3 = vcmask 917312   ;;  %s207_s0 = inlined_call_operand.vmem [shape: f32[16,8], index: 0, kind: input, shape index: {}]   ;;  %s208_s1 = inlined_call_operand.vmem [shape: f32[1,128], index: 1, kind: output, shape index: {}]  }
   0x1   :  { %v101_v0 = vld [vmem:[%s207_s0 + $0xf] sm:$0x1]   ;;  %v103_v1 = vld [vmem:[%s207_s0 + $0xd] sm:$0x1]   ;;  %v102_v2 = vld [vmem:[%s207_s0 + $0xe] sm:$0x1]  }
   0x2   :  { %7 = vrot.lane.b32.xlu0 %v101_v0, %s131_s10  ;;  %19 = vrot.lane.b32.xlu1 %v103_v1, %s132_s11  ;;  %v104_v3 = vld [vmem:[%s207_s0 + $0xc] sm:$0x1]   ;;  %s133_s16 = smov 112   ;;  %s134_s17 = smov 96   ;;  %v105_v4 = vld [vmem:[%s207_s0 + $0xb] sm:$0x1]  }
   0x3   :  { %v106_v5 = vld [vmem:[%s207_s0 + $0xa] sm:$0x1]   ;;  %v2_v6 = vld [vmem:[%s207_s0] sm:$0x1]   ;;  %s135_s24 = smov 88   ;;  %s136_s25 = smov 80  }
   0x4   :  { %4 = vst.msk [vmem:[#allocation0] sm:$0x1] %vm3_vm0, %v2_v6   ;;  %v107_v7 = vld [vmem:[%s207_s0 + $0x9] sm:$0x1]   ;;  %v108_v8 = vld [vmem:[%s207_s0 + $0x8] sm:$0x1]  }
   0x5   :  { %s137_s30 = smov 72   ;;  %s138_s2 = smov 64   ;;  %v109_v9 = vld [vmem:[%s207_s0 + $0x7] sm:$0x1]   ;;  %v110_v10 = vld [vmem:[%s207_s0 + $0x6] sm:$0x1]  }
   0x6   :  { %13 = vrot.lane.b32.xlu0 %v102_v2, %s133_s16  ;;  %25 = vrot.lane.b32.xlu1 %v104_v3, %s134_s17  ;;  %s139_s7 = smov 56   ;;  %s140_s8 = smov 48   ;;  %v111_v11 = vld [vmem:[%s207_s0 + $0x5] sm:$0x1]   ;;  %v112_v12 = vld [vmem:[%s207_s0 + $0x4] sm:$0x1]  }
   0x7   :  { %s141_s13 = smov 40   ;;  %s142_s14 = smov 32   ;;  %v113_v13 = vld [vmem:[%s207_s0 + $0x3] sm:$0x1]   ;;  %v114_v14 = vld [vmem:[%s207_s0 + $0x2] sm:$0x1]  }
   0x8   :  { %s143_s19 = smov 24   ;;  %s144_s20 = smov 16   ;;  %v115_v15 = vld [vmem:[%s207_s0 + $0x1] sm:$0x1]   ;;  %vm27_vm4 = vcmask 851712   ;;  %vm33_vm5 = vcmask 786112  }
   0x9   :  { %s145_s0 = smov 8   ;;  %vm39_vm6 = vcmask 720512   ;;  %vm45_vm7 = vcmask 654912   ;;  %vm51_vm8 = vcmask 589312   ;;  %vm57_vm9 = vcmask 523712  }
   0xa   :  { %31 = vrot.lane.b32.xlu0 %v105_v4, %s135_s24  ;;  %37 = vrot.lane.b32.xlu1 %v106_v5, %s136_s25  ;;  %vm63_vm10 = vcmask 458112   ;;  %vm69_vm11 = vcmask 392512   ;;  %vm75_vm12 = vcmask 326912   ;;  %vm81_vm13 = vcmask 261312  }
   0xb   :  { %vm87_vm14 = vcmask 195712   ;;  %vm93_vm15 = vcmask 130112  }
   0xe   :  { %43 = vrot.lane.b32.xlu0 %v107_v7, %s137_s30  ;;  %49 = vrot.lane.b32.xlu1 %v108_v8, %s138_s2 }
  0x12   :  { %55 = vrot.lane.b32.xlu0 %v109_v9, %s139_s7  ;;  %61 = vrot.lane.b32.xlu1 %v110_v10, %s140_s8 }
  0x16   :  { %67 = vrot.lane.b32.xlu0 %v111_v11, %s141_s13  ;;  %73 = vrot.lane.b32.xlu1 %v112_v12, %s142_s14 }
  0x1a   :  { %79 = vrot.lane.b32.xlu0 %v113_v13, %s143_s19  ;;  %85 = vrot.lane.b32.xlu1 %v114_v14, %s144_s20 }
  0x1e   :  { %91 = vrot.lane.b32.xlu0 %v115_v15, %s145_s0 }
  0x74   :  { %v8_v16 = vpop.permute.xlu0 %7   ;;  %v20_v17 = vpop.permute.xlu1 %19  }
  0x75   :  { %10 = vst.msk [vmem:[#allocation0] sm:$0x1] %vm9_vm1, %v8_v16  }
  0x78   :  { %v14_v18 = vpop.permute.xlu0 %13   ;;  %v26_v19 = vpop.permute.xlu1 %25  }
  0x79   :  { %16 = vst.msk [vmem:[#allocation0] sm:$0x1] %vm15_vm2, %v14_v18  }
  0x7a   :  { %22 = vst.msk [vmem:[#allocation0] sm:$0x1] %vm21_vm3, %v20_v17  }
  0x7b   :  { %28 = vst.msk [vmem:[#allocation0] sm:$0x1] %vm27_vm4, %v26_v19  }
  0x7c   :  { %v32_v20 = vpop.permute.xlu0 %31   ;;  %v38_v21 = vpop.permute.xlu1 %37  }
  0x7d   :  { %34 = vst.msk [vmem:[#allocation0] sm:$0x1] %vm33_vm5, %v32_v20  }
  0x7e   :  { %40 = vst.msk [vmem:[#allocation0] sm:$0x1] %vm39_vm6, %v38_v21  }
  0x80   :  { %v44_v22 = vpop.permute.xlu0 %43   ;;  %v50_v23 = vpop.permute.xlu1 %49  }
  0x81   :  { %46 = vst.msk [vmem:[#allocation0] sm:$0x1] %vm45_vm7, %v44_v22  }
  0x82   :  { %52 = vst.msk [vmem:[#allocation0] sm:$0x1] %vm51_vm8, %v50_v23  }
  0x84   :  { %v56_v24 = vpop.permute.xlu0 %55   ;;  %v62_v25 = vpop.permute.xlu1 %61  }
  0x85   :  { %58 = vst.msk [vmem:[#allocation0] sm:$0x1] %vm57_vm9, %v56_v24  }
  0x86   :  { %64 = vst.msk [vmem:[#allocation0] sm:$0x1] %vm63_vm10, %v62_v25  }
  0x88   :  { %v68_v26 = vpop.permute.xlu0 %67   ;;  %v74_v27 = vpop.permute.xlu1 %73  }
  0x89   :  { %70 = vst.msk [vmem:[#allocation0] sm:$0x1] %vm69_vm11, %v68_v26  }
  0x8a   :  { %76 = vst.msk [vmem:[#allocation0] sm:$0x1] %vm75_vm12, %v74_v27  }
  0x8c   :  { %v80_v28 = vpop.permute.xlu0 %79   ;;  %v86_v29 = vpop.permute.xlu1 %85  }
  0x8d   :  { %82 = vst.msk [vmem:[#allocation0] sm:$0x1] %vm81_vm13, %v80_v28  }
  0x8e   :  { %88 = vst.msk [vmem:[#allocation0] sm:$0x1] %vm87_vm14, %v86_v29  }
  0x90   :  { %v92_v30 = vpop.permute.xlu0 %91  }
  0x91   :  { %94 = vst.msk [vmem:[#allocation0] sm:$0x1] %vm93_vm15, %v92_v30  }
  0x98   :  { %v98_v31 = vld [vmem:[#allocation0] sm:$0x1] }
  0x99   :  { %100 = vst [vmem:[%s208_s1] sm:$0x1] %v98_v31 }

// kernel: conv_block_forward.1
= control target key start
LH: loop header
LB: loop body
LE: loop exit
PB: predicated region body
PF: predicated region fallthrough
CT: control target
= control target key end

     0   :  { %v21_v0 = vlaneseq  ;;  %v826_v3 = vmov 0   ;;  %vm148_vm3 = vcmask 523264   ;;  %vm828_vm7 = vmmov 1   ;;  %s1085_s0 = inlined_call_operand.vmem [shape: bf16[2,16,64], index: 0, kind: input, shape index: {}]   ;;  %s1086_s1 = inlined_call_operand.vmem [shape: bf16[192,128], index: 1, kind: input, shape index: {}]   ;;  %s1087_s3 = inlined_call_operand.vmem [shape: bf16[384,128], index: 3, kind: input, shape index: {}]   ;;  %s1088_s2 = inlined_call_operand.vmem [shape: f32[1,128], index: 2, kind: input, shape index: {}]   ;;  %s1089_s4 = inlined_call_operand.vmem [shape: f32[1,128], index: 4, kind: input, shape index: {}]   ;;  %s1090_s5 = inlined_call_operand.vmem [shape: f32[2,16,128], index: 5, kind: output, shape index: {}]  }
   0x1   :  { %v711_v1 = vld [vmem:[%s1085_s0] sm:$0xff]   ;;  %v718_v2 = vld [vmem:[%s1085_s0 + $0x8] sm:$0xff]   ;;  %266 = vmatprep.subr.bf16.mxu0 %v826_v3  ;;  %s827_s0 = smov 64   ;;  %v792_v14 = vld [vmem:[%s1086_s1 + $0x10] sm:$0xff]  }
   0x2   :  { %v712_v4 = vunpack.c.l.bf16 %v711_v1  ;;  %v713_v5 = vunpack.c.h.bf16 %v711_v1  ;;  %v716_v6 = vunpack.c.l.bf16 %v718_v2  ;;  %v717_v7 = vunpack.c.h.bf16 %v718_v2  ;;  %v790_v8 = vld [vmem:[%s1086_s1] sm:$0xff]   ;;  %v791_v11 = vld [vmem:[%s1086_s1 + $0x8] sm:$0xff]   ;;  %v793_v22 = vld [vmem:[%s1086_s1 + $0x18] sm:$0xff]  }
   0x3   :  { %v869_v9 = vshrl.u32 %v21_v0, 7  ;;  %267 = vmatpush1.bf16.msra.mxu0 %v790_v8  ;;  %v802_v26 = vld [vmem:[%s1087_s3 + $0x40] sm:$0xff]   ;;  %v804_v39 = vld [vmem:[%s1087_s3 + $0x48] sm:$0xff]   ;;  %v806_v45 = vld [vmem:[%s1087_s3 + $0x50] sm:$0xff]  }
   0x4   :  { %v780_v10 = vpack.i.bf16 %v713_v5, %v712_v4  ;;  %268 = vmatprep.subr.bf16.mxu0 %v826_v3  ;;  %v785_v12 = vpack.i.bf16 %v717_v7, %v716_v6  ;;  %v111_v16 = vrot.slane %v712_v4, 1  ;;  %v112_v17 = vrot.slane %v713_v5, 1  ;;  %719 = vmatprep.subr.bf16.mxu1 %v802_v26  ;;  %v803_v33 = vld [vmem:[%s1087_s3] sm:$0xff]   ;;  %v805_v41 = vld [vmem:[%s1087_s3 + $0x8] sm:$0xff]   ;;  %v796_v48 = vld [vmem:[%s1086_s1 + $0x30] sm:$0xff]  }
   0x5   :  { %v23_v13 = vadd.s32 8, %v869_v9  ;;  %v91_v18 = vrot.slane %v713_v5, 7  ;;  %v90_v19 = vrot.slane %v712_v4, 7  ;;  %v113_v21 = vrot.slane %v716_v6, 1  ;;  %v794_v34 = vld [vmem:[%s1086_s1 + $0x20] sm:$0xff]   ;;  %720 = vmatpush3.bf16.msra.mxu1 %v803_v33  ;;  %v795_v46 = vld [vmem:[%s1086_s1 + $0x28] sm:$0xff]  }
   0x6   :  { %781 = vrot.lane.b32.xlu0 %v780_v10, %s827_s0  ;;  %vm115_vm1 = vcmp.lt.s32.totalorder %v869_v9, 7  ;;  %v93_v25 = vrot.slane %v717_v7, 7  ;;  %vm94_vm2 = vcmp.lt.s32.totalorder %v869_v9, 1  ;;  %v25_v28 = vadd.s32 24, %v869_v9  ;;  %721 = vmatprep.subr.bf16.mxu1 %v804_v39  ;;  %v807_v49 = vld [vmem:[%s1087_s3 + $0x10] sm:$0xff]   ;;  %v808_v50 = vld [vmem:[%s1087_s3 + $0x58] sm:$0xff]  }
   0x7   :  { %269 = vmatpush1.bf16.msra.mxu0 %v791_v11  ;;  %v37_v15 = vand.u32 15, %v23_v13  ;;  %v117_v23 = vsel %vm115_vm1, %v112_v17, %v113_v21  ;;  %v118_v24 = vsel %vm115_vm1, %v111_v16, %v112_v17  ;;  %v114_v29 = vrot.slane %v717_v7, 1  ;;  %v797_v51 = vld [vmem:[%s1086_s1 + $0x38] sm:$0xff]   ;;  %v798_v52 = vld [vmem:[%s1086_s1 + $0x40] sm:$0xff]   ;;  %v799_v53 = vld [vmem:[%s1086_s1 + $0x48] sm:$0xff]  }
   0x8   :  { %270 = vmatprep.subr.bf16.mxu0 %v826_v3  ;;  %v97_v31 = vsel %vm94_vm2, %v90_v19, %v91_v18  ;;  %v98_v32 = vsel %vm94_vm2, %v93_v25, %v90_v19  ;;  %v51_v35 = vand.u32 15, %v25_v28  ;;  %v92_v38 = vrot.slane %v716_v6, 7  ;;  %v800_v54 = vld [vmem:[%s1086_s1 + $0x50] sm:$0xff]   ;;  %v801_v55 = vld [vmem:[%s1086_s1 + $0x58] sm:$0xff]   ;;  %v810_v13 = vld [vmem:[%s1087_s3 + $0x60] sm:$0xff]  }
   0x9   :  { %vm880_vm0 = vcmp.lt.s32.totalorder %v37_v15, 15  ;;  %v116_v36 = vsel %vm115_vm1, %v113_v21, %v114_v29  ;;  %v119_v37 = vsel %vm115_vm1, %v114_v29, %v111_v16  ;;  %722 = vmatpush3.bf16.msra.mxu1 %v805_v41  ;;  %v30_v56 = vand.u32 15, %v869_v9  ;;  %v812_v15 = vld [vmem:[%s1087_s3 + $0x68] sm:$0xff]   ;;  %v814_v17 = vld [vmem:[%s1087_s3 + $0x70] sm:$0xff]   ;;  %v816_v19 = vld [vmem:[%s1087_s3 + $0x78] sm:$0xff]  }
   0xa   :  { %786 = vrot.lane.b32.xlu0 %v785_v12, %s827_s0  ;;  %v129_v27 = vsel %vm880_vm0, %v117_v23, 0.0  ;;  %vm919_vm4 = vcmp.lt.s32.totalorder %v51_v35, 15  ;;  %v95_v43 = vsel %vm94_vm2, %v92_v38, %v93_v25  ;;  %v96_v44 = vsel %vm94_vm2, %v91_v18, %v92_v38  ;;  %723 = vmatprep.subr.bf16.mxu1 %v806_v45  ;;  %v809_v12 = vld [vmem:[%s1087_s3 + $0x18] sm:$0xff]   ;;  %v813_v16 = vld [vmem:[%s1087_s3 + $0x28] sm:$0xff]   ;;  %v815_v18 = vld [vmem:[%s1087_s3 + $0x30] sm:$0xff]  }
   0xb   :  { %271 = vmatpush1.bf16.msra.mxu0 %v792_v14  ;;  %v154_v30 = vpack.c.bf16 %v129_v27, %v118_v24  ;;  %v131_v42 = vsel %vm919_vm4, %v119_v37, 0.0  ;;  %v24_v57 = vadd.s32 16, %v869_v9  ;;  %vm971_vm5 = vcmp.gt.s32.totalorder %v30_v56, 0  ;;  %v811_v14 = vld [vmem:[%s1087_s3 + $0x20] sm:$0xff]   ;;  %v817_v21 = vld [vmem:[%s1087_s3 + $0x38] sm:$0xff]   ;;  %v820_v58 = vld [vmem:[%s1087_s3 + $0x90] sm:$0xff]  }
   0xc   :  { %272 = vmatprep.subr.bf16.mxu0 %v826_v3  ;;  %v156_v47 = vpack.c.bf16 %v131_v42, %v116_v36  ;;  %v107_v61 = vsel %vm971_vm5, %v98_v32, 0.0  ;;  %v658_v23 = vld [vmem:[%s1088_s2] ss:$0 sm:$0xff]  ;;  %vm698_vm8 = vmpackc.low %vm828_vm7, %vm971_vm5  ;;  %v821_v9 = vld [vmem:[%s1087_s3 + $0x98] sm:$0xff]  }
   0xd   :  { %671 = vmatprep.mubr.msk.bf16.mxu0 %vm148_vm3, %v154_v30  ;;  %724 = vmatpush3.bf16.msra.mxu1 %v807_v49  ;;  %v44_v59 = vand.u32 15, %v24_v57  ;;  %vm704_vm10 = vmpackc.low %vm880_vm0, %vm828_vm7  ;;  %v823_v0 = vld [vmem:[%s1087_s3 + $0xa8] sm:$0xff]   ;;  %v824_v20 = vld [vmem:[%s1087_s3 + $0xb0] sm:$0xff]  }
   0xe   :  { %725 = vmatprep.subr.bf16.mxu1 %v808_v50  ;;  %vm707_vm11 = vmpackc.low %vm919_vm4, %vm828_vm7 }
   0xf   :  { %273 = vmatpush1.bf16.msra.mxu0 %v793_v22  ;;  %vm977_vm6 = vcmp.gt.s32.totalorder %v44_v59, 0  ;;  %v818_v22 = vld [vmem:[%s1087_s3 + $0x80] sm:$0xff]  }
  0x10   :  { %274 = vmatprep.subr.bf16.mxu0 %v826_v3  ;;  %v109_v5 = vsel %vm977_vm6, %v96_v44, 0.0  ;;  %vm701_vm9 = vmpackc.low %vm828_vm7, %vm977_vm6 }
  0x11   :  { %726 = vmatpush3.bf16.msra.mxu1 %v809_v12 }
  0x12   :  { %727 = vmatprep.subr.bf16.mxu1 %v810_v13 }
  0x13   :  { %275 = vmatpush1.bf16.msra.mxu0 %v794_v34 }
  0x14   :  { %276 = vmatprep.subr.bf16.mxu0 %v826_v3 }
  0x15   :  { %728 = vmatpush3.bf16.msra.mxu1 %v811_v14 }
  0x16   :  { %729 = vmatprep.subr.bf16.mxu1 %v812_v15 }
  0x17   :  { %277 = vmatpush1.bf16.msra.mxu0 %v795_v46 }
  0x18   :  { %278 = vmatprep.subr.bf16.mxu0 %v826_v3 }
  0x19   :  { %730 = vmatpush3.bf16.msra.mxu1 %v813_v16 }
  0x1a   :  { %731 = vmatprep.subr.bf16.mxu1 %v814_v17  ;;  %v673_v17 = vld [vmem:[%s1089_s4] ss:$0 sm:$0xff] }
  0x1b   :  { %279 = vmatpush1.bf16.msra.mxu0 %v796_v48 }
  0x1c   :  { %280 = vmatprep.subr.bf16.mxu0 %v826_v3 }
  0x1d   :  { %732 = vmatpush3.bf16.msra.mxu1 %v815_v18 }
  0x1e   :  { %733 = vmatprep.subr.bf16.mxu1 %v816_v19 }
  0x1f   :  { %281 = vmatpush1.bf16.msra.mxu0 %v797_v51 }
  0x20   :  { %282 = vmatprep.subr.bf16.mxu0 %v826_v3 }
  0x21   :  { %734 = vmatpush3.bf16.msra.mxu1 %v817_v21 }
  0x22   :  { %757 = vmatprep.subr.bf16.mxu1 %v818_v22 }
  0x23   :  { %283 = vmatpush1.bf16.msra.mxu0 %v798_v52 }
  0x24   :  { %284 = vmatprep.subr.bf16.mxu0 %v826_v3 }
  0x27   :  { %285 = vmatpush1.bf16.msra.mxu0 %v799_v53 }
  0x28   :  { %286 = vmatprep.subr.bf16.mxu0 %v826_v3 }
  0x2b   :  { %287 = vmatpush1.bf16.msra.mxu0 %v800_v54 }
  0x2c   :  { %288 = vmatprep.subr.bf16.mxu0 %v826_v3 }
  0x2f   :  { %289 = vmatpush1.bf16.msra.mxu0 %v801_v55 }
  0x78   :  { %v782_v60 = vpop.permute.xlu0 %781 }
  0x79   :  { %v784_v62 = vunpack.i.h.bf16 %v782_v60  ;;  %v783_v63 = vunpack.i.l.bf16 %v782_v60 }
  0x7b   :  { %v149_v1 = vsel %vm148_vm3, %v107_v61, %v783_v63  ;;  %v150_v2 = vsel %vm148_vm3, %v97_v31, %v784_v62  ;;  %v819_v62 = vld [vmem:[%s1087_s3 + $0x88] sm:$0xff]  }
  0x7c   :  { %v153_v3 = vpack.c.bf16 %v150_v2, %v149_v1  ;;  %v787_v4 = vpop.permute.xlu0 %786  ;;  %v822_v2 = vld [vmem:[%s1087_s3 + $0xa0] sm:$0xff]  }
  0x7d   :  { %v789_v6 = vunpack.i.h.bf16 %v787_v4  ;;  %v788_v7 = vunpack.i.l.bf16 %v787_v4 }
  0x7e   :  { %299 = vmatmul.mubr.bf16.vlgmr.msra.gmra.mrb[0].mxu0 %v153_v3  ;;  %v825_v3 = vld [vmem:[%s1087_s3 + $0xb8] sm:$0xff]  }
  0x7f   :  { %672 = vmatprep.mubr.msk.bf16.mxu0 %vm148_vm3, %v156_v47  ;;  %v151_v8 = vsel %vm148_vm3, %v109_v5, %v788_v7  ;;  %v152_v10 = vsel %vm148_vm3, %v95_v43, %v789_v6 }
  0x80   :  { %v155_v11 = vpack.c.bf16 %v152_v10, %v151_v8 }
  0x86   :  { %307 = vmatmul.mubr.bf16.gmra.mrb[4].mxu0 %v155_v11 }
 0x151   :  { %v300_v24 = vpop.f32.mrb[0].mxu0 }
 0x152   :  { %v301_v25 = vadd.f32 %v658_v23, %v300_v24  ;;  %v302_v26 = vpop.f32.mrb[1].mxu0 }
 0x153   :  { %v303_v27 = vpop.f32.mrb[2].mxu0 }
 0x154   :  { %v315_v28 = vmax.f32 %v301_v25, 0.0  ;;  %v304_v29 = vadd.f32 %v658_v23, %v303_v27  ;;  %v305_v30 = vpop.f32.mrb[3].mxu0 }
 0x156   :  { %v316_v31 = vmax.f32 %v304_v29, 0.0  ;;  %v319_v32 = vrot.slane %v315_v28, 7  ;;  %v331_v33 = vrot.slane %v315_v28, 1 }
 0x158   :  { %v320_v34 = vrot.slane %v316_v31, 7  ;;  %v332_v35 = vrot.slane %v316_v31, 1  ;;  %v344_v36 = vpack.c.bf16 %v316_v31, %v315_v28 }
 0x159   :  { %v308_v37 = vpop.f32.mrb[4].mxu0 }
 0x15a   :  { %v309_v38 = vadd.f32 %v658_v23, %v308_v37  ;;  %v310_v39 = vpop.f32.mrb[5].mxu0  ;;  %580 = vmatprep.mubr.bf16.mxu1 %v344_v36  ;;  %v325_v41 = vsel %vm94_vm2, %v319_v32, %v320_v34  ;;  %v337_v42 = vsel %vm115_vm1, %v331_v33, %v332_v35 }
 0x15b   :  { %v311_v43 = vpop.f32.mrb[6].mxu0 }
 0x15c   :  { %v317_v44 = vmax.f32 %v309_v38, 0.0  ;;  %v312_v45 = vadd.f32 %v658_v23, %v311_v43  ;;  %v313_v46 = vpop.f32.mrb[7].mxu0 }
 0x15e   :  { %v321_v47 = vrot.slane %v317_v44, 7  ;;  %v333_v48 = vrot.slane %v317_v44, 1  ;;  %v318_v49 = vmax.f32 %v312_v45, 0.0 }
 0x160   :  { %v322_v50 = vrot.slane %v318_v49, 7  ;;  %v334_v51 = vrot.slane %v318_v49, 1  ;;  %v347_v52 = vpack.c.bf16 %v318_v49, %v317_v44  ;;  %v324_v53 = vsel %vm94_vm2, %v320_v34, %v321_v47 }
 0x161   :  { %v336_v54 = vsel %vm115_vm1, %v332_v35, %v333_v48 }
 0x162   :  { %v335_v55 = vsel %vm115_vm1, %v333_v48, %v334_v51  ;;  %v338_v56 = vsel %vm115_vm1, %v334_v51, %v331_v33  ;;  %v326_v57 = vsel %vm94_vm2, %v322_v50, %v319_v32  ;;  %v323_v59 = vsel %vm94_vm2, %v321_v47, %v322_v50 }
 0x163   :  { %v708_v60 = vpack.c.bf16 %v338_v56, %v335_v55  ;;  %v699_v61 = vpack.c.bf16 %v325_v41, %v326_v57  ;;  %v702_v63 = vpack.c.bf16 %v323_v59, %v324_v53  ;;  %v705_v1 = vpack.c.bf16 %v336_v54, %v337_v42 }
 0x165   :  { %700 = vmatmul.mubr.msk.bf16.vlgmr.msra.gmra.mrb[0].mxu1 %vm698_vm8, %v699_v61 }
 0x166   :  { %758 = vmatpush3.bf16.msra.mxu1 %v818_v22  ;;  %588 = vmatprep.mubr.bf16.mxu1 %v347_v52 }
 0x167   :  { %759 = vmatprep.subr.bf16.mxu1 %v819_v62 }
 0x16a   :  { %760 = vmatpush3.bf16.msra.mxu1 %v819_v62 }
 0x16b   :  { %761 = vmatprep.subr.bf16.mxu1 %v820_v58 }
 0x16d   :  { %703 = vmatmul.mubr.msk.bf16.gmra.mrb[4].mxu1 %vm701_vm9, %v702_v63 }
 0x16e   :  { %762 = vmatpush3.bf16.msra.mxu1 %v820_v58  ;;  %773 = vmatprep.mubr.msk.bf16.mxu1 %vm704_vm10, %v705_v1 }
 0x16f   :  { %763 = vmatprep.subr.bf16.mxu1 %v821_v9 }
 0x172   :  { %764 = vmatpush3.bf16.msra.mxu1 %v821_v9 }
 0x173   :  { %765 = vmatprep.subr.bf16.mxu1 %v822_v2 }
 0x176   :  { %766 = vmatpush3.bf16.msra.mxu1 %v822_v2 }
 0x177   :  { %767 = vmatprep.subr.bf16.mxu1 %v823_v0 }
 0x17a   :  { %768 = vmatpush3.bf16.msra.mxu1 %v823_v0 }
 0x17b   :  { %769 = vmatprep.subr.bf16.mxu1 %v824_v20 }
 0x17e   :  { %770 = vmatpush3.bf16.msra.mxu1 %v824_v20 }
 0x17f   :  { %771 = vmatprep.subr.bf16.mxu1 %v825_v3 }
 0x182   :  { %772 = vmatpush3.bf16.msra.mxu1 %v825_v3 }
 0x185   :  { %774 = vmatmul.mubr.msk.bf16.vlgmr.msra.gmra.mrb[8].mxu1 %vm707_vm11, %v708_v60 }
 0x238   :  { %v735_v4 = vpop.f32.mrb[0].mxu1 }
 0x239   :  { %v736_v5 = vpop.f32.mrb[1].mxu1 }
 0x23a   :  { %v737_v6 = vadd.f32 %v736_v5, %v735_v4  ;;  %v738_v7 = vpop.f32.mrb[2].mxu1 }
 0x23b   :  { %v739_v8 = vpop.f32.mrb[3].mxu1 }
 0x23c   :  { %v740_v10 = vadd.f32 %v739_v8, %v738_v7  ;;  %v583_v19 = vadd.f32 %v737_v6, %v673_v17 }
 0x23e   :  { %v586_v26 = vadd.f32 %v740_v10, %v673_v17 }
 0x240   :  { %v741_v11 = vpop.f32.mrb[4].mxu1 }
 0x241   :  { %v742_v12 = vpop.f32.mrb[5].mxu1 }
 0x242   :  { %v743_v13 = vadd.f32 %v742_v12, %v741_v11  ;;  %v744_v14 = vpop.f32.mrb[6].mxu1 }
 0x243   :  { %v745_v15 = vpop.f32.mrb[7].mxu1 }
 0x244   :  { %v746_v16 = vadd.f32 %v745_v15, %v744_v14  ;;  %v591_v18 = vadd.f32 %v743_v13, %v673_v17 }
 0x246   :  { %v594_v23 = vadd.f32 %v746_v16, %v673_v17 }
 0x258   :  { %v775_v40 = vpop.f32.mrb[8].mxu1 }
 0x259   :  { %v640_v21 = vadd.f32 %v775_v40, %v591_v18  ;;  %v631_v22 = vpop.f32.mrb[9].mxu1 }
 0x25a   :  { %v632_v24 = vadd.f32 %v631_v22, %v583_v19  ;;  %v776_v25 = vpop.f32.mrb[10].mxu1 }
 0x25b   :  { %v648_v27 = vmax.f32 %v640_v21, 0.0  ;;  %v643_v28 = vadd.f32 %v776_v25, %v594_v23  ;;  %v634_v29 = vpop.f32.mrb[11].mxu1 }
 0x25c   :  { %v646_v30 = vmax.f32 %v632_v24, 0.0  ;;  %v635_v31 = vadd.f32 %v634_v29, %v586_v26 }
 0x25d   :  { %652 = vst [vmem:[%s1090_s5 + $0x10] sm:$0xff] %v648_v27  ;;  %v649_v32 = vmax.f32 %v643_v28, 0.0 }
 0x25e   :  { %650 = vst [vmem:[%s1090_s5] sm:$0xff] %v646_v30  ;;  %v647_v33 = vmax.f32 %v635_v31, 0.0 }
 0x25f   :  { %653 = vst [vmem:[%s1090_s5 + $0x18] sm:$0xff] %v649_v32 }
 0x260   :  { %651 = vst [vmem:[%s1090_s5 + $0x8] sm:$0xff] %v647_v33 }

</bundles_post_ra>
